<compile_context>
chip_gen: v5e
topology: v5e:2x2
jax: 0.10.0
libtpu: 0.0.40
codegen_flags: <defaults>
</compile_context>

<pallas_src>
import functools

import jax
import jax.numpy as jnp
from jax import lax
from jax.experimental import pallas as pl
from jax.experimental.pallas import tpu as pltpu

BN_EPS = 1e-3
DEFAULT_TILE_M = 1024


# ----------------------------- Pallas kernels --------------------------------
def convT_stats_kernel(p_ref, w_ref, y_ref, s_ref):
    """Polyphase im2col matmul (bf16 -> f32 acc) + per-channel sum/sumsq accumulation."""
    y = jnp.dot(p_ref[0], w_ref[0], preferred_element_type=jnp.float32)  # (tm, Cout_pad)
    y_ref[0] = y

    s1 = jnp.sum(y, axis=0, keepdims=True)          # (1, Cout_pad)
    s2 = jnp.sum(y * y, axis=0, keepdims=True)      # (1, Cout_pad)
    blk = jnp.concatenate(
        [s1, s2, jnp.zeros((6, s1.shape[1]), jnp.float32)], axis=0)  # (8, Cout_pad)

    @pl.when(pl.program_id(1) == 0)
    def _():
        s_ref[...] = jnp.zeros_like(s_ref)

    s_ref[0] += blk


def bn_relu_kernel(y_ref, scale_ref, bias_ref, o_ref):
    """Per-element FMA with folded BN scale/bias + ReLU (lane-dense 128-wide)."""
    o_ref[0] = jnp.maximum(y_ref[0] * scale_ref[...] + bias_ref[...], 0.0
                           ).astype(o_ref.dtype)


# ------------------------------ glue (JAX) ------------------------------------
def _round_up(a, b):
    return (a + b - 1) // b * b


def _phase_taps(ph, K, s, pad):
    """Kernel taps k and input offsets d (i = m + d) contributing to output phase ph."""
    ks = [k for k in range(K) if (ph + pad - k) % s == 0]
    ds = [(ph + pad - k) // s for k in ks]
    return ks, ds


def _polyphase_im2col(x, w, K, s, pad):
    """Zero-free polyphase patches: P_all (s*s, M, T*T*Cin), W_all (s*s, T*T*Cin, Cout)."""
    N, Cin, H, W_ = x.shape
    Cout = w.shape[1]
    OH = (H - 1) * s - 2 * pad + K
    OW = (W_ - 1) * s - 2 * pad + K
    assert K % s == 0 and OH % s == 0 and OW % s == 0, \
        "polyphase path requires K % stride == 0 and stride | output size"
    OHs, OWs = OH // s, OW // s

    taps = [_phase_taps(ph, K, s, pad) for ph in range(s)]
    T = len(taps[0][0])
    assert all(len(t[0]) == T for t in taps)

    all_d = [d for _, ds in taps for d in ds]
    d_min, d_max = min(all_d), max(all_d)
    L = max(0, -d_min)
    Rh = max(0, (OHs - 1) + d_max - (H - 1))
    Rw = max(0, (OWs - 1) + d_max - (W_ - 1))
    xp = jnp.pad(x, ((0, 0), (0, 0), (L, Rh), (L, Rw)))

    P_list, W_list = [], []
    for ph in range(s):
        ks_h, ds_h = taps[ph]
        for pw in range(s):
            ks_w, ds_w = taps[pw]
            cols, rows = [], []
            for kh, dh in zip(ks_h, ds_h):
                for kw_, dw in zip(ks_w, ds_w):
                    cols.append(xp[:, :, L + dh:L + dh + OHs,
                                   L + dw:L + dw + OWs])        # (N,Cin,OHs,OWs)
                    rows.append(w[:, :, kh, kw_])                # (Cin,Cout)
            Pp = jnp.stack(cols, axis=0)                         # (T*T,N,Cin,OHs,OWs)
            Pp = jnp.transpose(Pp, (1, 3, 4, 0, 2))              # (N,OHs,OWs,T*T,Cin)
            P_list.append(Pp.reshape(N * OHs * OWs, T * T * Cin))
            W_list.append(jnp.stack(rows, axis=0).reshape(T * T * Cin, Cout))
    return jnp.stack(P_list, 0), jnp.stack(W_list, 0), OH, OW


@functools.partial(jax.jit, static_argnames=("K", "stride", "pad", "tile_m"))
def basic_conv_transpose2d(x, w, gamma, beta, *, K=4, stride=2, pad=1,
                           tile_m=DEFAULT_TILE_M):
    N, Cin, H, W_ = x.shape
    Cout = w.shape[1]
    s = stride

    P_all, W_all, OH, OW = _polyphase_im2col(x, w, K, s, pad)
    num_phases, M_phase, CKK = P_all.shape

    Cout_pad = _round_up(Cout, 128)                 # lane-dense output / MXU N dim
    CKK_pad = _round_up(CKK, 128)                   # contraction dim multiple of 128
    tm = min(tile_m, _round_up(M_phase, 8))
    M_pad = _round_up(M_phase, tm)                  # padded rows are all-zero -> no
    m_tiles = M_pad // tm                           # effect on sum/sumsq stats

    P_pad = jnp.pad(P_all, ((0, 0), (0, M_pad - M_phase), (0, CKK_pad - CKK))
                    ).astype(jnp.bfloat16)
    W_pad = jnp.pad(W_all, ((0, 0), (0, CKK_pad - CKK), (0, Cout_pad - Cout))
                    ).astype(jnp.bfloat16)

    # ---- pass 1: tiled polyphase matmul + global BN sum/sumsq accumulation ----
    flops = 2 * num_phases * M_pad * CKK_pad * Cout_pad
    bytes_acc = (num_phases * M_pad * CKK_pad * 2
                 + num_phases * CKK_pad * Cout_pad * 2
                 + num_phases * M_pad * Cout_pad * 4
                 + num_phases * 8 * Cout_pad * 4)
    y_flat, stats = pl.pallas_call(
        convT_stats_kernel,
        out_shape=(
            jax.ShapeDtypeStruct((num_phases, M_pad, Cout_pad), jnp.float32),
            jax.ShapeDtypeStruct((num_phases, 8, Cout_pad), jnp.float32),
        ),
        grid_spec=pltpu.PrefetchScalarGridSpec(
            num_scalar_prefetch=0,
            grid=(num_phases, m_tiles),
            in_specs=[
                pl.BlockSpec((1, tm, CKK_pad), lambda p, m: (p, m, 0)),
                pl.BlockSpec((1, CKK_pad, Cout_pad), lambda p, m: (p, 0, 0)),
            ],
            out_specs=[
                pl.BlockSpec((1, tm, Cout_pad), lambda p, m: (p, m, 0)),
                pl.BlockSpec((1, 8, Cout_pad), lambda p, m: (p, 0, 0)),
            ],
        ),
        compiler_params=pltpu.CompilerParams(
            dimension_semantics=("parallel", "arbitrary"),
            vmem_limit_bytes=32 * 1024 * 1024),
        cost_estimate=pl.CostEstimate(flops=flops, transcendentals=0,
                                      bytes_accessed=bytes_acc),
    )(P_pad, W_pad)

    # ---- finalize global BatchNorm stats, fold into scale/bias (tiny) ----
    count = jnp.float32(N * OH * OW)
    tot = jnp.sum(stats[:, 0, :], axis=0)
    tot_sq = jnp.sum(stats[:, 1, :], axis=0)
    mean = tot / count
    var = jnp.maximum(tot_sq / count - mean * mean, 0.0)     # biased variance
    inv = lax.rsqrt(var + BN_EPS)
    gamma_pad = jnp.pad(gamma.astype(jnp.float32), (0, Cout_pad - Cout))
    beta_pad = jnp.pad(beta.astype(jnp.float32), (0, Cout_pad - Cout))
    scale = (gamma_pad * inv).reshape(1, Cout_pad)
    bias = (beta_pad - mean * gamma_pad * inv).reshape(1, Cout_pad)

    # ---- pass 2: normalize + ReLU (fully parallel, lane-dense stores) ----
    out_flat = pl.pallas_call(
        bn_relu_kernel,
        out_shape=jax.ShapeDtypeStruct((num_phases, M_pad, Cout_pad), jnp.float32),
        grid_spec=pltpu.PrefetchScalarGridSpec(
            num_scalar_prefetch=0,
            grid=(num_phases, m_tiles),
            in_specs=[
                pl.BlockSpec((1, tm, Cout_pad), lambda p, m: (p, m, 0)),
                pl.BlockSpec((1, Cout_pad), lambda p, m: (0, 0)),
                pl.BlockSpec((1, Cout_pad), lambda p, m: (0, 0)),
            ],
            out_specs=pl.BlockSpec((1, tm, Cout_pad), lambda p, m: (p, m, 0)),
        ),
        compiler_params=pltpu.CompilerParams(
            dimension_semantics=("parallel", "parallel"),
            vmem_limit_bytes=32 * 1024 * 1024),
    )(y_flat, scale, bias)

    # ---- strip padding, interleave phases back into NCHW ----
    OHs, OWs = OH // s, OW // s
    out = out_flat[:, :M_phase, :Cout]                      # (s*s, N*OHs*OWs, Cout)
    out = out.reshape(s, s, N, OHs, OWs, Cout)              # (ph, pw, n, i, j, c)
    out = jnp.transpose(out, (2, 5, 3, 0, 4, 1))            # (n, c, i, ph, j, pw)
    return out.reshape(N, Cout, OH, OW)


# --------------------------- pure-JAX reference ------------------------------
def _reference(x, w, gamma, beta, *, K=4, stride=2, pad=1):
    wf = w[:, :, ::-1, ::-1]
    rhs = jnp.transpose(wf, (1, 0, 2, 3))  # (Cout, Cin, K, K)
    y = lax.conv_general_dilated(
        x, rhs,
        window_strides=(1, 1),
        padding=[(K - 1 - pad, K - 1 - pad)] * 2,
        lhs_dilation=(stride, stride),
        dimension_numbers=("NCHW", "OIHW", "NCHW"),
    )
    mean = jnp.mean(y, axis=(0, 2, 3), keepdims=True)
    var = jnp.mean((y - mean) ** 2, axis=(0, 2, 3), keepdims=True)
    yhat = (y - mean) * lax.rsqrt(var + BN_EPS)
    out = yhat * gamma.reshape(1, -1, 1, 1) + beta.reshape(1, -1, 1, 1)
    return jnp.maximum(out, 0.0)


if __name__ == "__main__":
    key = jax.random.PRNGKey(0)
    kx, kw = jax.random.split(key)

    N, Cin, H, W = 2, 4, 16, 16
    Cout, K, stride, pad = 8, 4, 2, 1

    x = jax.random.normal(kx, (N, Cin, H, W), dtype=jnp.float32)

    # kaiming_uniform init (a=0 -> gain=sqrt(2)); torch fan_in for ConvTranspose2d
    # weight (Cin, Cout, K, K) is Cout*K*K.
    fan_in = Cout * K * K
    bound = jnp.sqrt(2.0) * jnp.sqrt(3.0 / fan_in)
    w = jax.random.uniform(kw, (Cin, Cout, K, K), jnp.float32, -bound, bound)

    gamma = jnp.ones((Cout,), jnp.float32)   # BN default init
    beta = jnp.zeros((Cout,), jnp.float32)

    out = basic_conv_transpose2d(x, w, gamma, beta, K=K, stride=stride, pad=pad)
    out = jax.block_until_ready(out)

    # Reference uses the same bf16-rounded operands (kernel feeds the MXU bf16 with
    # f32 accumulation), so the comparison validates kernel logic, not bf16 rounding.
    xq = x.astype(jnp.bfloat16).astype(jnp.float32)
    wq = w.astype(jnp.bfloat16).astype(jnp.float32)
    ref = _reference(xq, wq, gamma, beta, K=K, stride=stride, pad=pad)

    OH = (H - 1) * stride - 2 * pad + K
    OW = (W - 1) * stride - 2 * pad + K
    assert out.shape == (N, Cout, OH, OW)
    assert jnp.allclose(out, ref, atol=2e-3, rtol=2e-3), \
        float(jnp.max(jnp.abs(out - ref)))

    print("KERNEL_OK")
</pallas_src>

<mosaic_0001>
module attributes {stable_mosaic.version = 11 : i64} {
  func.func @convT_stats_kernel(%arg0: i32, %arg1: i32, %arg2: memref<1x512x128xbf16, #tpu.memory_space<vmem>>, %arg3: memref<1x128x128xbf16, #tpu.memory_space<vmem>>, %arg4: memref<1x512x128xf32, #tpu.memory_space<vmem>>, %arg5: memref<1x8x128xf32, #tpu.memory_space<vmem>>) attributes {dimension_semantics = [#tpu.dimension_semantics<parallel>, #tpu.dimension_semantics<arbitrary>], iteration_bounds = array<i64: 4, 1>, scalar_prefetch = 0 : i64, scratch_operands = 0 : i64, tpu.core_type = #tpu.core_type<tc>, window_params = [{transform_indices = @transform_0, window_bounds = array<i64: 1, 512, 128>}, {transform_indices = @transform_1, window_bounds = array<i64: 1, 128, 128>}, {transform_indices = @transform_2, window_bounds = array<i64: 1, 512, 128>}, {transform_indices = @transform_3, window_bounds = array<i64: 1, 8, 128>}]} {
    %c0 = arith.constant 0 : index
    %c0_0 = arith.constant 0 : index
    %c0_1 = arith.constant 0 : index
    %0 = vector.load %arg2[%c0, %c0_0, %c0_1] : memref<1x512x128xbf16, #tpu.memory_space<vmem>>, vector<1x512x128xbf16>
    %1 = vector.shape_cast %0 : vector<1x512x128xbf16> to vector<512x128xbf16>
    %c0_2 = arith.constant 0 : index
    %c0_3 = arith.constant 0 : index
    %c0_4 = arith.constant 0 : index
    %2 = vector.load %arg3[%c0_2, %c0_3, %c0_4] : memref<1x128x128xbf16, #tpu.memory_space<vmem>>, vector<1x128x128xbf16>
    %3 = vector.shape_cast %2 : vector<1x128x128xbf16> to vector<128x128xbf16>
    %cst = arith.constant dense<0.000000e+00> : vector<512x128xf32>
    %4 = tpu.matmul %1, %3, %cst {dimension_numbers = #tpu.dot_dimension_numbers<[1], [0], [0], [1], [0, 0, 1, 1], [], []>} : vector<512x128xbf16>, vector<128x128xbf16>, vector<512x128xf32> -> vector<512x128xf32>
    %c0_5 = arith.constant 0 : index
    %c0_6 = arith.constant 0 : index
    %c0_7 = arith.constant 0 : index
    %5 = vector.load %arg4[%c0_5, %c0_6, %c0_7] : memref<1x512x128xf32, #tpu.memory_space<vmem>>, vector<1x512x128xf32>
    %6 = vector.shape_cast %5 : vector<1x512x128xf32> to vector<512x128xf32>
    %7 = vector.shape_cast %4 : vector<512x128xf32> to vector<1x512x128xf32>
    tpu.vector_store %arg4[%c0_5, %c0_6, %c0_7], %7 {strides = array<i32>} : memref<1x512x128xf32, #tpu.memory_space<vmem>>, vector<1x512x128xf32>,
    %cst_8 = arith.constant dense<0.000000e+00> : vector<128xf32>
    %8 = vector.multi_reduction <add>, %4, %cst_8 [0] : vector<512x128xf32> to vector<128xf32>
    %9 = vector.shape_cast %8 : vector<128xf32> to vector<1x128xf32>
    %10 = arith.mulf %4, %4 : vector<512x128xf32>
    %cst_9 = arith.constant dense<0.000000e+00> : vector<128xf32>
    %11 = vector.multi_reduction <add>, %10, %cst_9 [0] : vector<512x128xf32> to vector<128xf32>
    %12 = vector.shape_cast %11 : vector<128xf32> to vector<1x128xf32>
    %cst_10 = arith.constant 0.000000e+00 : f32
    %13 = vector.broadcast %cst_10 : f32 to vector<6x128xf32>
    %14 = tpu.concatenate %9, %12, %13 in 0 : vector<1x128xf32>, vector<1x128xf32>, vector<6x128xf32> -> vector<8x128xf32>
    %c0_i32 = arith.constant 0 : i32
    %15 = arith.cmpi eq, %arg1, %c0_i32 : i32
    %16 = arith.extui %15 : i1 to i32
    %c0_i32_11 = arith.constant 0 : i32
    %17 = arith.cmpi ne, %16, %c0_i32_11 : i32
    scf.if %17 {
      %cst_18 = arith.constant 0.000000e+00 : f32
      %24 = vector.broadcast %cst_18 : f32 to vector<1x8x128xf32>
      %c0_19 = arith.constant 0 : index
      %c0_20 = arith.constant 0 : index
      %c0_21 = arith.constant 0 : index
      %25 = vector.load %arg5[%c0_19, %c0_20, %c0_21] : memref<1x8x128xf32, #tpu.memory_space<vmem>>, vector<1x8x128xf32>
      tpu.vector_store %arg5[%c0_19, %c0_20, %c0_21], %24 {strides = array<i32>} : memref<1x8x128xf32, #tpu.memory_space<vmem>>, vector<1x8x128xf32>,
    } else {
    }
    %c0_12 = arith.constant 0 : index
    %c0_13 = arith.constant 0 : index
    %c0_14 = arith.constant 0 : index
    %18 = vector.load %arg5[%c0_12, %c0_13, %c0_14] : memref<1x8x128xf32, #tpu.memory_space<vmem>>, vector<1x8x128xf32>
    %19 = vector.shape_cast %18 : vector<1x8x128xf32> to vector<8x128xf32>
    %20 = arith.addf %19, %14 : vector<8x128xf32>
    %c0_15 = arith.constant 0 : index
    %c0_16 = arith.constant 0 : index
    %c0_17 = arith.constant 0 : index
    %21 = vector.load %arg5[%c0_15, %c0_16, %c0_17] : memref<1x8x128xf32, #tpu.memory_space<vmem>>, vector<1x8x128xf32>
    %22 = vector.shape_cast %21 : vector<1x8x128xf32> to vector<8x128xf32>
    %23 = vector.shape_cast %20 : vector<8x128xf32> to vector<1x8x128xf32>
    tpu.vector_store %arg5[%c0_15, %c0_16, %c0_17], %23 {strides = array<i32>} : memref<1x8x128xf32, #tpu.memory_space<vmem>>, vector<1x8x128xf32>,
    return
  }
  func.func @transform_0(%arg0: i32, %arg1: i32) -> (i32, i32, i32) {
    %c0_i32 = arith.constant 0 : i32
    %c0_i32_0 = arith.constant 0 : i32
    return %arg0, %arg1, %c0_i32 : i32, i32, i32
  }
  func.func @transform_1(%arg0: i32, %arg1: i32) -> (i32, i32, i32) {
    %c0_i32 = arith.constant 0 : i32
    %c0_i32_0 = arith.constant 0 : i32
    %c0_i32_1 = arith.constant 0 : i32
    return %arg0, %c0_i32, %c0_i32_0 : i32, i32, i32
  }
  func.func @transform_2(%arg0: i32, %arg1: i32) -> (i32, i32, i32) {
    %c0_i32 = arith.constant 0 : i32
    %c0_i32_0 = arith.constant 0 : i32
    return %arg0, %arg1, %c0_i32 : i32, i32, i32
  }
  func.func @transform_3(%arg0: i32, %arg1: i32) -> (i32, i32, i32) {
    %c0_i32 = arith.constant 0 : i32
    %c0_i32_0 = arith.constant 0 : i32
    %c0_i32_1 = arith.constant 0 : i32
    return %arg0, %c0_i32, %c0_i32_0 : i32, i32, i32
  }
}

module attributes {stable_mosaic.version = 11 : i64} {
  func.func @bn_relu_kernel(%arg0: i32, %arg1: i32, %arg2: memref<1x512x128xf32, #tpu.memory_space<vmem>>, %arg3: memref<1x128xf32, #tpu.memory_space<vmem>>, %arg4: memref<1x128xf32, #tpu.memory_space<vmem>>, %arg5: memref<1x512x128xf32, #tpu.memory_space<vmem>>) attributes {dimension_semantics = [#tpu.dimension_semantics<parallel>, #tpu.dimension_semantics<parallel>], iteration_bounds = array<i64: 4, 1>, scalar_prefetch = 0 : i64, scratch_operands = 0 : i64, tpu.core_type = #tpu.core_type<tc>, window_params = [{transform_indices = @transform_0, window_bounds = array<i64: 1, 512, 128>}, {pipeline_mode = #tpu.pipeline_mode<synchronous>, transform_indices = @transform_1, window_bounds = array<i64: 1, 128>}, {pipeline_mode = #tpu.pipeline_mode<synchronous>, transform_indices = @transform_2, window_bounds = array<i64: 1, 128>}, {transform_indices = @transform_3, window_bounds = array<i64: 1, 512, 128>}]} {
    %c0 = arith.constant 0 : index
    %c0_0 = arith.constant 0 : index
    %c0_1 = arith.constant 0 : index
    %0 = vector.load %arg2[%c0, %c0_0, %c0_1] : memref<1x512x128xf32, #tpu.memory_space<vmem>>, vector<1x512x128xf32>
    %1 = vector.shape_cast %0 : vector<1x512x128xf32> to vector<512x128xf32>
    %c0_2 = arith.constant 0 : index
    %c0_3 = arith.constant 0 : index
    %2 = vector.load %arg3[%c0_2, %c0_3] : memref<1x128xf32, #tpu.memory_space<vmem>>, vector<1x128xf32>
    %3 = vector.broadcast %2 : vector<1x128xf32> to vector<512x128xf32>
    %4 = arith.mulf %1, %3 : vector<512x128xf32>
    %c0_4 = arith.constant 0 : index
    %c0_5 = arith.constant 0 : index
    %5 = vector.load %arg4[%c0_4, %c0_5] : memref<1x128xf32, #tpu.memory_space<vmem>>, vector<1x128xf32>
    %6 = vector.broadcast %5 : vector<1x128xf32> to vector<512x128xf32>
    %7 = arith.addf %4, %6 : vector<512x128xf32>
    %cst = arith.constant 0.000000e+00 : f32
    %8 = vector.broadcast %cst : f32 to vector<512x128xf32>
    %9 = arith.maximumf %7, %8 : vector<512x128xf32>
    %c0_6 = arith.constant 0 : index
    %c0_7 = arith.constant 0 : index
    %c0_8 = arith.constant 0 : index
    %10 = vector.load %arg5[%c0_6, %c0_7, %c0_8] : memref<1x512x128xf32, #tpu.memory_space<vmem>>, vector<1x512x128xf32>
    %11 = vector.shape_cast %10 : vector<1x512x128xf32> to vector<512x128xf32>
    %12 = vector.shape_cast %9 : vector<512x128xf32> to vector<1x512x128xf32>
    tpu.vector_store %arg5[%c0_6, %c0_7, %c0_8], %12 {strides = array<i32>} : memref<1x512x128xf32, #tpu.memory_space<vmem>>, vector<1x512x128xf32>,
    return
  }
  func.func @transform_0(%arg0: i32, %arg1: i32) -> (i32, i32, i32) {
    %c0_i32 = arith.constant 0 : i32
    %c0_i32_0 = arith.constant 0 : i32
    return %arg0, %arg1, %c0_i32 : i32, i32, i32
  }
  func.func @transform_1(%arg0: i32, %arg1: i32) -> (i32, i32) {
    %c0_i32 = arith.constant 0 : i32
    %c0_i32_0 = arith.constant 0 : i32
    %c0_i32_1 = arith.constant 0 : i32
    return %c0_i32, %c0_i32_0 : i32, i32
  }
  func.func @transform_2(%arg0: i32, %arg1: i32) -> (i32, i32) {
    %c0_i32 = arith.constant 0 : i32
    %c0_i32_0 = arith.constant 0 : i32
    %c0_i32_1 = arith.constant 0 : i32
    return %c0_i32, %c0_i32_0 : i32, i32
  }
  func.func @transform_3(%arg0: i32, %arg1: i32) -> (i32, i32, i32) {
    %c0_i32 = arith.constant 0 : i32
    %c0_i32_0 = arith.constant 0 : i32
    return %arg0, %arg1, %c0_i32 : i32, i32, i32
  }
}

</mosaic_0001>

<bundles_post_ra>
// kernel: basic_conv_transpose2d.3
= control target key start
LH: loop header
LB: loop body
LE: loop exit
PB: predicated region body
PF: predicated region fallthrough
CT: control target
= control target key end

     0   :  { %s708_s12 = smov 0   ;;  %s710_s13 = smov 0   ;;  %s1014_s0 = inlined_call_operand.vmem [shape: f32[4,512,128], index: 0, kind: input, shape index: {}]   ;;  %s1015_s1 = inlined_call_operand.vmem [shape: f32[1,128], index: 1, kind: input, shape index: {}]   ;;  %s1016_s2 = inlined_call_operand.vmem [shape: f32[1,128], index: 2, kind: input, shape index: {}]   ;;  %s1017_s3 = inlined_call_operand.vmem [shape: f32[4,512,128], index: 3, kind: output, shape index: {}]  }
   0x1   :  { %s712_s14 = smov 0  }
   0x2 LB: > { %s25_s15 = sadd.s32 1, %s682_s13  ;;  %p629_p0 = scmp.ge.s32.totalorder %s686_s14, 1  ;;  %s686_s14 = sphi %s712_s14, %s13_s14   ;;  %s682_s13 = sphi %s710_s13, %s1019_s13   ;;  %s678_s12 = sphi %s708_s12, %s1018_s12  }
   0x3   : > { %p27_p1 = scmp.ge.s32.totalorder %s25_s15, 4  ;;  %p158_p2 = scmp.lt.s32.totalorder %s686_s14, 5 }
   0x5   : > { %s1021_s15 = smov (%p27_p1, %s25_s15), 0  ;;  %p159_p3 = pnand %p629_p0, %p158_p2 }
   0x6   : > { %p191_p4 = scmp.lt.s32.totalorder (!%p159_p3), %s678_s12, 3 }
   0x7   : > { %162 = sbr.rel (%p159_p3) target bundleno = 86 (0x56), region = 32 }
   0xc   : > { %s1023_s12 = smov (!%p191_p4, %s678_s12), 3  ;;  %v729_v0 = vld [vmem:[%s1015_s1] ss:$0 sm:$0xff] }
   0xd   : > { %s636_s18 = sshll.u32 %s1023_s12, 9  ;;  %v739_v1 = vld [vmem:[%s1016_s2] ss:$0 sm:$0xff] }
   0xe   : > { %s734_s21 = scalar_lea.vmem %s1014_s0, %s636_s18  ;;  %s762_s26 = scalar_lea.vmem %s1017_s3, %s636_s18 }
   0xf   : > { %v210_v2 = vld [vmem:[%s734_s21] sm:$0xff]  ;;  %v211_v3 = vld [vmem:[%s734_s21 + $0x8] sm:$0xff]  ;;  %v212_v4 = vld [vmem:[%s734_s21 + $0x10] sm:$0xff] }
  0x10   : > { %v278_v5 = vmul.f32 %v729_v0, %v210_v2  ;;  %v279_v6 = vmul.f32 %v729_v0, %v211_v3  ;;  %v280_v7 = vmul.f32 %v729_v0, %v212_v4  ;;  %v213_v8 = vld [vmem:[%s734_s21 + $0x18] sm:$0xff]  ;;  %v214_v9 = vld [vmem:[%s734_s21 + $0x20] sm:$0xff]  ;;  %v215_v10 = vld [vmem:[%s734_s21 + $0x28] sm:$0xff] }
  0x11   : > { %v281_v11 = vmul.f32 %v729_v0, %v213_v8  ;;  %v282_v12 = vmul.f32 %v729_v0, %v214_v9  ;;  %v283_v13 = vmul.f32 %v729_v0, %v215_v10  ;;  %v216_v14 = vld [vmem:[%s734_s21 + $0x30] sm:$0xff]  ;;  %v217_v15 = vld [vmem:[%s734_s21 + $0x38] sm:$0xff]  ;;  %v218_v24 = vld [vmem:[%s734_s21 + $0x40] sm:$0xff] }
  0x12   : > { %v346_v16 = vadd.f32 %v739_v1, %v278_v5  ;;  %v347_v17 = vadd.f32 %v739_v1, %v279_v6  ;;  %v348_v18 = vadd.f32 %v739_v1, %v280_v7  ;;  %v284_v19 = vmul.f32 %v729_v0, %v216_v14  ;;  %v219_v25 = vld [vmem:[%s734_s21 + $0x48] sm:$0xff]  ;;  %v220_v26 = vld [vmem:[%s734_s21 + $0x50] sm:$0xff]  ;;  %v221_v31 = vld [vmem:[%s734_s21 + $0x58] sm:$0xff] }
  0x13   : > { %v349_v20 = vadd.f32 %v739_v1, %v281_v11  ;;  %v350_v21 = vadd.f32 %v739_v1, %v282_v12  ;;  %v351_v22 = vadd.f32 %v739_v1, %v283_v13  ;;  %v285_v23 = vmul.f32 %v729_v0, %v217_v15  ;;  %v222_v32 = vld [vmem:[%s734_s21 + $0x60] sm:$0xff]  ;;  %v223_v33 = vld [vmem:[%s734_s21 + $0x68] sm:$0xff]  ;;  %v224_v37 = vld [vmem:[%s734_s21 + $0x70] sm:$0xff] }
  0x14   : > { %v410_v27 = vmax.f32 %v346_v16, 0.0  ;;  %v411_v28 = vmax.f32 %v347_v17, 0.0  ;;  %v412_v29 = vmax.f32 %v348_v18, 0.0  ;;  %v352_v30 = vadd.f32 %v739_v1, %v284_v19  ;;  %v225_v42 = vld [vmem:[%s734_s21 + $0x78] sm:$0xff]  ;;  %v226_v54 = vld [vmem:[%s734_s21 + $0x80] sm:$0xff]  ;;  %v227_v55 = vld [vmem:[%s734_s21 + $0x88] sm:$0xff] }
  0x15   : > { %v413_v34 = vmax.f32 %v349_v20, 0.0  ;;  %v414_v35 = vmax.f32 %v350_v21, 0.0  ;;  %v353_v36 = vadd.f32 %v739_v1, %v285_v23  ;;  %v415_v38 = vmax.f32 %v351_v22, 0.0  ;;  %v228_v56 = vld [vmem:[%s734_s21 + $0x90] sm:$0xff]  ;;  %v229_v59 = vld [vmem:[%s734_s21 + $0x98] sm:$0xff]  ;;  %v230_v63 = vld [vmem:[%s734_s21 + $0xa0] sm:$0xff] }
  0x16   : > { %474 = vst [vmem:[%s762_s26] sm:$0xff] %v410_v27  ;;  %v286_v39 = vmul.f32 %v729_v0, %v218_v24  ;;  %v287_v40 = vmul.f32 %v729_v0, %v219_v25  ;;  %v288_v41 = vmul.f32 %v729_v0, %v220_v26  ;;  %v416_v43 = vmax.f32 %v352_v30, 0.0  ;;  %v231_v6 = vld [vmem:[%s734_s21 + $0xa8] sm:$0xff]  ;;  %v232_v10 = vld [vmem:[%s734_s21 + $0xb0] sm:$0xff]  ;;  %v233_v14 = vld [vmem:[%s734_s21 + $0xb8] sm:$0xff] }
  0x17   : > { %475 = vst [vmem:[%s762_s26 + $0x8] sm:$0xff] %v411_v28  ;;  %v289_v44 = vmul.f32 %v729_v0, %v221_v31  ;;  %v290_v45 = vmul.f32 %v729_v0, %v222_v32  ;;  %v291_v46 = vmul.f32 %v729_v0, %v223_v33  ;;  %v292_v50 = vmul.f32 %v729_v0, %v224_v37  ;;  %v234_v18 = vld [vmem:[%s734_s21 + $0xc0] sm:$0xff]  ;;  %v235_v22 = vld [vmem:[%s734_s21 + $0xc8] sm:$0xff]  ;;  %v236_v26 = vld [vmem:[%s734_s21 + $0xd0] sm:$0xff] }
  0x18   : > { %476 = vst [vmem:[%s762_s26 + $0x10] sm:$0xff] %v412_v29  ;;  %v354_v47 = vadd.f32 %v739_v1, %v286_v39  ;;  %v355_v48 = vadd.f32 %v739_v1, %v287_v40  ;;  %v356_v49 = vadd.f32 %v739_v1, %v288_v41  ;;  %v417_v51 = vmax.f32 %v353_v36, 0.0  ;;  %v237_v30 = vld [vmem:[%s734_s21 + $0xd8] sm:$0xff] }
  0x19   : > { %477 = vst [vmem:[%s762_s26 + $0x18] sm:$0xff] %v413_v34  ;;  %v357_v52 = vadd.f32 %v739_v1, %v289_v44  ;;  %v293_v53 = vmul.f32 %v729_v0, %v225_v42  ;;  %v358_v58 = vadd.f32 %v739_v1, %v290_v45  ;;  %v359_v62 = vadd.f32 %v739_v1, %v291_v46  ;;  %v238_v34 = vld [vmem:[%s734_s21 + $0xe0] sm:$0xff]  ;;  %v240_v42 = vld [vmem:[%s734_s21 + $0xf0] sm:$0xff]  ;;  %v241_v46 = vld [vmem:[%s734_s21 + $0xf8] sm:$0xff] }
  0x1a   : > { %478 = vst [vmem:[%s762_s26 + $0x20] sm:$0xff] %v414_v35  ;;  %v418_v57 = vmax.f32 %v354_v47, 0.0  ;;  %v419_v60 = vmax.f32 %v355_v48, 0.0  ;;  %v420_v61 = vmax.f32 %v356_v49, 0.0  ;;  %v360_v2 = vadd.f32 %v739_v1, %v292_v50  ;;  %v242_v50 = vld [vmem:[%s734_s21 + $0x100] sm:$0xff] }
  0x1b   : > { %479 = vst [vmem:[%s762_s26 + $0x28] sm:$0xff] %v415_v38  ;;  %v294_v3 = vmul.f32 %v729_v0, %v226_v54  ;;  %v295_v4 = vmul.f32 %v729_v0, %v227_v55  ;;  %v296_v5 = vmul.f32 %v729_v0, %v228_v56  ;;  %v421_v7 = vmax.f32 %v357_v52, 0.0  ;;  %v239_v38 = vld [vmem:[%s734_s21 + $0xe8] sm:$0xff] }
  0x1c   : > { %480 = vst [vmem:[%s762_s26 + $0x30] sm:$0xff] %v416_v43  ;;  %v361_v8 = vadd.f32 %v739_v1, %v293_v53  ;;  %v297_v9 = vmul.f32 %v729_v0, %v229_v59  ;;  %v422_v11 = vmax.f32 %v358_v58, 0.0  ;;  %v298_v13 = vmul.f32 %v729_v0, %v230_v63  ;;  %v243_v54 = vld [vmem:[%s734_s21 + $0x108] sm:$0xff]  ;;  %v244_v58 = vld [vmem:[%s734_s21 + $0x110] sm:$0xff] }
  0x1d   : > { %481 = vst [vmem:[%s762_s26 + $0x38] sm:$0xff] %v417_v51  ;;  %v362_v12 = vadd.f32 %v739_v1, %v294_v3  ;;  %v423_v15 = vmax.f32 %v359_v62, 0.0  ;;  %v363_v16 = vadd.f32 %v739_v1, %v295_v4  ;;  %v299_v17 = vmul.f32 %v729_v0, %v231_v6  ;;  %v245_v62 = vld [vmem:[%s734_s21 + $0x118] sm:$0xff]  ;;  %v246_v4 = vld [vmem:[%s734_s21 + $0x120] sm:$0xff] }
  0x1e   : > { %482 = vst [vmem:[%s762_s26 + $0x40] sm:$0xff] %v418_v57  ;;  %v424_v19 = vmax.f32 %v360_v2, 0.0  ;;  %v364_v20 = vadd.f32 %v739_v1, %v296_v5  ;;  %v300_v21 = vmul.f32 %v729_v0, %v232_v10  ;;  %v425_v23 = vmax.f32 %v361_v8, 0.0  ;;  %v247_v8 = vld [vmem:[%s734_s21 + $0x128] sm:$0xff] }
  0x1f   : > { %483 = vst [vmem:[%s762_s26 + $0x48] sm:$0xff] %v419_v60  ;;  %v365_v24 = vadd.f32 %v739_v1, %v297_v9  ;;  %v301_v25 = vmul.f32 %v729_v0, %v233_v14  ;;  %v426_v27 = vmax.f32 %v362_v12, 0.0  ;;  %v366_v28 = vadd.f32 %v739_v1, %v298_v13  ;;  %v248_v12 = vld [vmem:[%s734_s21 + $0x130] sm:$0xff] }
  0x20   : > { %484 = vst [vmem:[%s762_s26 + $0x50] sm:$0xff] %v420_v61  ;;  %v302_v29 = vmul.f32 %v729_v0, %v234_v18  ;;  %v427_v31 = vmax.f32 %v363_v16, 0.0  ;;  %v367_v32 = vadd.f32 %v739_v1, %v299_v17  ;;  %v303_v33 = vmul.f32 %v729_v0, %v235_v22  ;;  %v249_v16 = vld [vmem:[%s734_s21 + $0x138] sm:$0xff] }
  0x21   : > { %485 = vst [vmem:[%s762_s26 + $0x58] sm:$0xff] %v421_v7  ;;  %v428_v35 = vmax.f32 %v364_v20, 0.0  ;;  %v368_v36 = vadd.f32 %v739_v1, %v300_v21  ;;  %v304_v37 = vmul.f32 %v729_v0, %v236_v26  ;;  %v429_v39 = vmax.f32 %v365_v24, 0.0  ;;  %v250_v20 = vld [vmem:[%s734_s21 + $0x140] sm:$0xff]  ;;  %v251_v24 = vld [vmem:[%s734_s21 + $0x148] sm:$0xff] }
  0x22   : > { %486 = vst [vmem:[%s762_s26 + $0x60] sm:$0xff] %v422_v11  ;;  %v369_v40 = vadd.f32 %v739_v1, %v301_v25  ;;  %v305_v41 = vmul.f32 %v729_v0, %v237_v30  ;;  %v430_v43 = vmax.f32 %v366_v28, 0.0  ;;  %v370_v44 = vadd.f32 %v739_v1, %v302_v29  ;;  %v252_v28 = vld [vmem:[%s734_s21 + $0x150] sm:$0xff] }
  0x23   : > { %487 = vst [vmem:[%s762_s26 + $0x68] sm:$0xff] %v423_v15  ;;  %v306_v45 = vmul.f32 %v729_v0, %v238_v34  ;;  %v431_v47 = vmax.f32 %v367_v32, 0.0  ;;  %v371_v48 = vadd.f32 %v739_v1, %v303_v33  ;;  %v307_v49 = vmul.f32 %v729_v0, %v239_v38  ;;  %v253_v32 = vld [vmem:[%s734_s21 + $0x158] sm:$0xff] }
  0x24   : > { %488 = vst [vmem:[%s762_s26 + $0x70] sm:$0xff] %v424_v19  ;;  %v432_v51 = vmax.f32 %v368_v36, 0.0  ;;  %v372_v52 = vadd.f32 %v739_v1, %v304_v37  ;;  %v308_v53 = vmul.f32 %v729_v0, %v240_v42  ;;  %v433_v55 = vmax.f32 %v369_v40, 0.0  ;;  %v254_v36 = vld [vmem:[%s734_s21 + $0x160] sm:$0xff]  ;;  %v255_v40 = vld [vmem:[%s734_s21 + $0x168] sm:$0xff] }
  0x25   : > { %489 = vst [vmem:[%s762_s26 + $0x78] sm:$0xff] %v425_v23  ;;  %v373_v56 = vadd.f32 %v739_v1, %v305_v41  ;;  %v309_v57 = vmul.f32 %v729_v0, %v241_v46  ;;  %v434_v59 = vmax.f32 %v370_v44, 0.0  ;;  %v374_v60 = vadd.f32 %v739_v1, %v306_v45  ;;  %v256_v44 = vld [vmem:[%s734_s21 + $0x170] sm:$0xff] }
  0x26   : > { %490 = vst [vmem:[%s762_s26 + $0x80] sm:$0xff] %v426_v27  ;;  %v310_v61 = vmul.f32 %v729_v0, %v242_v50  ;;  %v435_v63 = vmax.f32 %v371_v48, 0.0  ;;  %v375_v2 = vadd.f32 %v739_v1, %v307_v49  ;;  %v311_v3 = vmul.f32 %v729_v0, %v243_v54  ;;  %v257_v48 = vld [vmem:[%s734_s21 + $0x178] sm:$0xff] }
  0x27   : > { %491 = vst [vmem:[%s762_s26 + $0x88] sm:$0xff] %v427_v31  ;;  %v436_v5 = vmax.f32 %v372_v52, 0.0  ;;  %v376_v6 = vadd.f32 %v739_v1, %v308_v53  ;;  %v312_v7 = vmul.f32 %v729_v0, %v244_v58  ;;  %v437_v9 = vmax.f32 %v373_v56, 0.0  ;;  %v258_v52 = vld [vmem:[%s734_s21 + $0x180] sm:$0xff]  ;;  %v259_v56 = vld [vmem:[%s734_s21 + $0x188] sm:$0xff] }
  0x28   : > { %492 = vst [vmem:[%s762_s26 + $0x90] sm:$0xff] %v428_v35  ;;  %v377_v10 = vadd.f32 %v739_v1, %v309_v57  ;;  %v313_v11 = vmul.f32 %v729_v0, %v245_v62  ;;  %v438_v13 = vmax.f32 %v374_v60, 0.0  ;;  %v378_v14 = vadd.f32 %v739_v1, %v310_v61  ;;  %v260_v60 = vld [vmem:[%s734_s21 + $0x190] sm:$0xff] }
  0x29   : > { %493 = vst [vmem:[%s762_s26 + $0x98] sm:$0xff] %v429_v39  ;;  %v314_v15 = vmul.f32 %v729_v0, %v246_v4  ;;  %v439_v17 = vmax.f32 %v375_v2, 0.0  ;;  %v379_v18 = vadd.f32 %v739_v1, %v311_v3  ;;  %v315_v19 = vmul.f32 %v729_v0, %v247_v8  ;;  %v261_v2 = vld [vmem:[%s734_s21 + $0x198] sm:$0xff] }
  0x2a   : > { %494 = vst [vmem:[%s762_s26 + $0xa0] sm:$0xff] %v430_v43  ;;  %v440_v21 = vmax.f32 %v376_v6, 0.0  ;;  %v380_v22 = vadd.f32 %v739_v1, %v312_v7  ;;  %v316_v23 = vmul.f32 %v729_v0, %v248_v12  ;;  %v441_v25 = vmax.f32 %v377_v10, 0.0  ;;  %v273_v3 = vld [vmem:[%s734_s21 + $0x1f8] sm:$0xff]  ;;  %v262_v7 = vld [vmem:[%s734_s21 + $0x1a0] sm:$0xff] }
  0x2b   : > { %495 = vst [vmem:[%s762_s26 + $0xa8] sm:$0xff] %v431_v47  ;;  %v381_v26 = vadd.f32 %v739_v1, %v313_v11  ;;  %v317_v27 = vmul.f32 %v729_v0, %v249_v16  ;;  %v442_v29 = vmax.f32 %v378_v14, 0.0  ;;  %v382_v30 = vadd.f32 %v739_v1, %v314_v15  ;;  %v263_v11 = vld [vmem:[%s734_s21 + $0x1a8] sm:$0xff]  ;;  %v264_v15 = vld [vmem:[%s734_s21 + $0x1b0] sm:$0xff] }
  0x2c   : > { %496 = vst [vmem:[%s762_s26 + $0xb0] sm:$0xff] %v432_v51  ;;  %v318_v31 = vmul.f32 %v729_v0, %v250_v20  ;;  %v443_v33 = vmax.f32 %v379_v18, 0.0  ;;  %v383_v34 = vadd.f32 %v739_v1, %v315_v19  ;;  %v319_v35 = vmul.f32 %v729_v0, %v251_v24  ;;  %v265_v20 = vld [vmem:[%s734_s21 + $0x1b8] sm:$0xff]  ;;  %v266_v24 = vld [vmem:[%s734_s21 + $0x1c0] sm:$0xff] }
  0x2d   : > { %497 = vst [vmem:[%s762_s26 + $0xb8] sm:$0xff] %v433_v55  ;;  %v444_v37 = vmax.f32 %v380_v22, 0.0  ;;  %v384_v38 = vadd.f32 %v739_v1, %v316_v23  ;;  %v320_v39 = vmul.f32 %v729_v0, %v252_v28  ;;  %v445_v41 = vmax.f32 %v381_v26, 0.0 }
  0x2e   : > { %498 = vst [vmem:[%s762_s26 + $0xc0] sm:$0xff] %v434_v59  ;;  %v385_v42 = vadd.f32 %v739_v1, %v317_v27  ;;  %v321_v43 = vmul.f32 %v729_v0, %v253_v32  ;;  %v446_v45 = vmax.f32 %v382_v30, 0.0  ;;  %v386_v46 = vadd.f32 %v739_v1, %v318_v31 }
  0x2f   : > { %499 = vst [vmem:[%s762_s26 + $0xc8] sm:$0xff] %v435_v63  ;;  %v322_v47 = vmul.f32 %v729_v0, %v254_v36  ;;  %v447_v49 = vmax.f32 %v383_v34, 0.0  ;;  %v387_v50 = vadd.f32 %v739_v1, %v319_v35  ;;  %v323_v51 = vmul.f32 %v729_v0, %v255_v40 }
  0x30   : > { %500 = vst [vmem:[%s762_s26 + $0xd0] sm:$0xff] %v436_v5  ;;  %v448_v53 = vmax.f32 %v384_v38, 0.0  ;;  %v388_v54 = vadd.f32 %v739_v1, %v320_v39  ;;  %v324_v55 = vmul.f32 %v729_v0, %v256_v44  ;;  %v449_v57 = vmax.f32 %v385_v42, 0.0 }
  0x31   : > { %501 = vst [vmem:[%s762_s26 + $0xd8] sm:$0xff] %v437_v9  ;;  %v389_v58 = vadd.f32 %v739_v1, %v321_v43  ;;  %v325_v59 = vmul.f32 %v729_v0, %v257_v48  ;;  %v450_v61 = vmax.f32 %v386_v46, 0.0  ;;  %v390_v62 = vadd.f32 %v739_v1, %v322_v47 }
  0x32   : > { %502 = vst [vmem:[%s762_s26 + $0xe0] sm:$0xff] %v438_v13  ;;  %v326_v63 = vmul.f32 %v729_v0, %v258_v52  ;;  %v451_v4 = vmax.f32 %v387_v50, 0.0  ;;  %v391_v5 = vadd.f32 %v739_v1, %v323_v51  ;;  %v327_v6 = vmul.f32 %v729_v0, %v259_v56 }
  0x33   : > { %503 = vst [vmem:[%s762_s26 + $0xe8] sm:$0xff] %v439_v17  ;;  %v452_v8 = vmax.f32 %v388_v54, 0.0  ;;  %v392_v9 = vadd.f32 %v739_v1, %v324_v55  ;;  %v328_v10 = vmul.f32 %v729_v0, %v260_v60  ;;  %v453_v12 = vmax.f32 %v389_v58, 0.0 }
  0x34   : > { %504 = vst [vmem:[%s762_s26 + $0xf0] sm:$0xff] %v440_v21  ;;  %v393_v13 = vadd.f32 %v739_v1, %v325_v59  ;;  %v329_v14 = vmul.f32 %v729_v0, %v261_v2  ;;  %v341_v16 = vmul.f32 %v729_v0, %v273_v3  ;;  %v454_v17 = vmax.f32 %v390_v62, 0.0 }
  0x35   : > { %505 = vst [vmem:[%s762_s26 + $0xf8] sm:$0xff] %v441_v25  ;;  %v394_v18 = vadd.f32 %v739_v1, %v326_v63  ;;  %v330_v19 = vmul.f32 %v729_v0, %v262_v7  ;;  %v455_v21 = vmax.f32 %v391_v5, 0.0  ;;  %v395_v22 = vadd.f32 %v739_v1, %v327_v6 }
  0x36   : > { %506 = vst [vmem:[%s762_s26 + $0x100] sm:$0xff] %v442_v29  ;;  %v331_v23 = vmul.f32 %v729_v0, %v263_v11  ;;  %v952_v25 = vadd.f32 %v739_v1, %v341_v16  ;;  %v456_v26 = vmax.f32 %v392_v9, 0.0  ;;  %v396_v27 = vadd.f32 %v739_v1, %v328_v10  ;;  %v267_v29 = vld [vmem:[%s734_s21 + $0x1c8] sm:$0xff] }
  0x37   : > { %507 = vst [vmem:[%s762_s26 + $0x108] sm:$0xff] %v443_v33  ;;  %v332_v28 = vmul.f32 %v729_v0, %v264_v15  ;;  %v457_v30 = vmax.f32 %v393_v13, 0.0  ;;  %v397_v31 = vadd.f32 %v739_v1, %v329_v14  ;;  %v333_v32 = vmul.f32 %v729_v0, %v265_v20  ;;  %v268_v33 = vld [vmem:[%s734_s21 + $0x1d0] sm:$0xff] }
  0x38   : > { %508 = vst [vmem:[%s762_s26 + $0x110] sm:$0xff] %v444_v37  ;;  %v458_v34 = vmax.f32 %v394_v18, 0.0  ;;  %v398_v35 = vadd.f32 %v739_v1, %v330_v19  ;;  %v334_v36 = vmul.f32 %v729_v0, %v266_v24  ;;  %v269_v37 = vld [vmem:[%s734_s21 + $0x1d8] sm:$0xff]  ;;  %v459_v38 = vmax.f32 %v395_v22, 0.0 }
  0x39   : > { %509 = vst [vmem:[%s762_s26 + $0x118] sm:$0xff] %v445_v41  ;;  %v399_v39 = vadd.f32 %v739_v1, %v331_v23  ;;  %v335_v40 = vmul.f32 %v729_v0, %v267_v29  ;;  %v270_v41 = vld [vmem:[%s734_s21 + $0x1e0] sm:$0xff]  ;;  %v460_v42 = vmax.f32 %v396_v27, 0.0  ;;  %v400_v43 = vadd.f32 %v739_v1, %v332_v28 }
  0x3a   : > { %510 = vst [vmem:[%s762_s26 + $0x120] sm:$0xff] %v446_v45  ;;  %v336_v44 = vmul.f32 %v729_v0, %v268_v33  ;;  %v271_v45 = vld [vmem:[%s734_s21 + $0x1e8] sm:$0xff]  ;;  %v461_v46 = vmax.f32 %v397_v31, 0.0  ;;  %v401_v47 = vadd.f32 %v739_v1, %v333_v32  ;;  %v337_v48 = vmul.f32 %v729_v0, %v269_v37 }
  0x3b   : > { %511 = vst [vmem:[%s762_s26 + $0x128] sm:$0xff] %v447_v49  ;;  %v272_v49 = vld [vmem:[%s734_s21 + $0x1f0] sm:$0xff]  ;;  %v462_v50 = vmax.f32 %v398_v35, 0.0  ;;  %v402_v51 = vadd.f32 %v739_v1, %v334_v36  ;;  %v338_v52 = vmul.f32 %v729_v0, %v270_v41  ;;  %v403_v54 = vadd.f32 %v739_v1, %v335_v40 }
  0x3c   : > { %512 = vst [vmem:[%s762_s26 + $0x130] sm:$0xff] %v448_v53  ;;  %v463_v53 = vmax.f32 %v399_v39, 0.0  ;;  %v339_v55 = vmul.f32 %v729_v0, %v271_v45  ;;  %v464_v56 = vmax.f32 %v400_v43, 0.0  ;;  %v340_v58 = vmul.f32 %v729_v0, %v272_v49 }
  0x3d   : > { %513 = vst [vmem:[%s762_s26 + $0x138] sm:$0xff] %v449_v57  ;;  %v404_v57 = vadd.f32 %v739_v1, %v336_v44  ;;  %v465_v59 = vmax.f32 %v401_v47, 0.0  ;;  %v405_v60 = vadd.f32 %v739_v1, %v337_v48  ;;  %v406_v62 = vadd.f32 %v739_v1, %v338_v52 }
  0x3e   : > { %514 = vst [vmem:[%s762_s26 + $0x140] sm:$0xff] %v450_v61  ;;  %v466_v61 = vmax.f32 %v402_v51, 0.0  ;;  %v467_v63 = vmax.f32 %v403_v54, 0.0  ;;  %v407_v2 = vadd.f32 %v739_v1, %v339_v55  ;;  %v408_v3 = vadd.f32 %v739_v1, %v340_v58 }
  0x3f   : > { %515 = vst [vmem:[%s762_s26 + $0x148] sm:$0xff] %v451_v4  ;;  %v468_v0 = vmax.f32 %v404_v57, 0.0  ;;  %v469_v4 = vmax.f32 %v405_v60, 0.0  ;;  %v470_v5 = vmax.f32 %v406_v62, 0.0 }
  0x40   : > { %516 = vst [vmem:[%s762_s26 + $0x150] sm:$0xff] %v452_v8  ;;  %v471_v6 = vmax.f32 %v407_v2, 0.0  ;;  %v472_v7 = vmax.f32 %v408_v3, 0.0  ;;  %v473_v8 = vmax.f32 %v952_v25, 0.0 }
  0x41   : > { %517 = vst [vmem:[%s762_s26 + $0x158] sm:$0xff] %v453_v12 }
  0x42   : > { %518 = vst [vmem:[%s762_s26 + $0x160] sm:$0xff] %v454_v17 }
  0x43   : > { %519 = vst [vmem:[%s762_s26 + $0x168] sm:$0xff] %v455_v21 }
  0x44   : > { %520 = vst [vmem:[%s762_s26 + $0x170] sm:$0xff] %v456_v26 }
  0x45   : > { %521 = vst [vmem:[%s762_s26 + $0x178] sm:$0xff] %v457_v30 }
  0x46   : > { %522 = vst [vmem:[%s762_s26 + $0x180] sm:$0xff] %v458_v34 }
  0x47   : > { %523 = vst [vmem:[%s762_s26 + $0x188] sm:$0xff] %v459_v38 }
  0x48   : > { %524 = vst [vmem:[%s762_s26 + $0x190] sm:$0xff] %v460_v42 }
  0x49   : > { %525 = vst [vmem:[%s762_s26 + $0x198] sm:$0xff] %v461_v46 }
  0x4a   : > { %526 = vst [vmem:[%s762_s26 + $0x1a0] sm:$0xff] %v462_v50 }
  0x4b   : > { %527 = vst [vmem:[%s762_s26 + $0x1a8] sm:$0xff] %v463_v53 }
  0x4c   : > { %528 = vst [vmem:[%s762_s26 + $0x1b0] sm:$0xff] %v464_v56 }
  0x4d   : > { %529 = vst [vmem:[%s762_s26 + $0x1b8] sm:$0xff] %v465_v59 }
  0x4e   : > { %530 = vst [vmem:[%s762_s26 + $0x1c0] sm:$0xff] %v466_v61 }
  0x4f   : > { %531 = vst [vmem:[%s762_s26 + $0x1c8] sm:$0xff] %v467_v63 }
  0x50   : > { %532 = vst [vmem:[%s762_s26 + $0x1d0] sm:$0xff] %v468_v0 }
  0x51   : > { %533 = vst [vmem:[%s762_s26 + $0x1d8] sm:$0xff] %v469_v4 }
  0x52   : > { %534 = vst [vmem:[%s762_s26 + $0x1e0] sm:$0xff] %v470_v5 }
  0x53   : > { %535 = vst [vmem:[%s762_s26 + $0x1e8] sm:$0xff] %v471_v6 }
  0x54   : > { %536 = vst [vmem:[%s762_s26 + $0x1f0] sm:$0xff] %v472_v7 }
  0x55   : > { %537 = vst [vmem:[%s762_s26 + $0x1f8] sm:$0xff] %v473_v8 }
  0x56 PF: > { %s13_s14 = sadd.s32 1, %s686_s14   ;;  %s1018_s12 = smov %s682_s13 }
  0x57   : > { %p10_p5 = scmp.ge.s32.totalorder %s13_s14, 6   ;;  %s1019_s13 = smov %s1021_s15 }
  0x59   :  { %12 = sbr.rel (!%p10_p5) target bundleno = 2 (0x2), region = 62 }

// kernel: basic_conv_transpose2d.2
= control target key start
LH: loop header
LB: loop body
LE: loop exit
PB: predicated region body
PF: predicated region fallthrough
CT: control target
= control target key end

     0   :  { %s1448_s12 = smov 0   ;;  %s1450_s13 = smov 0   ;;  %s1891_s0 = inlined_call_operand.vmem [shape: bf16[4,512,128], index: 0, kind: input, shape index: {}]   ;;  %s1892_s1 = inlined_call_operand.vmem [shape: bf16[4,128,128], index: 1, kind: input, shape index: {}]   ;;  %s1893_s2 = inlined_call_operand.vmem [shape: f32[4,512,128], index: 2, kind: output, shape index: {0}]   ;;  %s1894_s3 = inlined_call_operand.vmem [shape: f32[4,8,128], index: 3, kind: output, shape index: {1}]  }
   0x1   :  { %s1452_s14 = smov 0  }
   0x2 LB: > { %s26_s15 = sadd.s32 1, %s1422_s13  ;;  %p1142_p0 = scmp.ge.s32.totalorder %s1426_s14, 1  ;;  %s1426_s14 = sphi %s1452_s14, %s14_s14   ;;  %s1422_s13 = sphi %s1450_s13, %s1896_s13   ;;  %s1418_s12 = sphi %s1448_s12, %s1895_s12  }
   0x3   : > { %p28_p1 = scmp.ge.s32.totalorder %s26_s15, 4  ;;  %p171_p2 = scmp.lt.s32.totalorder %s1426_s14, 5 }
   0x5   : > { %s1898_s15 = smov (%p28_p1, %s26_s15), 0  ;;  %p172_p3 = pnand %p1142_p0, %p171_p2 }
   0x6   : > { %p213_p4 = scmp.lt.s32.totalorder (!%p172_p3), %s1418_s12, 3 }
   0x7   : > { %175 = sbr.rel (%p172_p3) target bundleno = 408 (0x198), region = 28 }
   0xc   : > { %s1900_s12 = smov (!%p213_p4, %s1418_s12), 3  ;;  %vm996_vm0 = vcmask 1040384   ;;  %vm998_vm1 = vcmask 1041408  }
   0xd   : > { %s1313_s16 = sshll.u32 %s1900_s12, 6  ;;  %s1312_s20 = sshll.u32 %s1900_s12, 8 }
   0xe   : > { %s1472_s19 = scalar_lea.vmem %s1892_s1, %s1313_s16  ;;  %s1485_s23 = scalar_lea.vmem %s1891_s0, %s1312_s20 }
   0xf   : > { %v1354_v0 = vld [vmem:[%s1472_s19 + $0x38] sm:$0xff]  ;;  %v1353_v1 = vld [vmem:[%s1472_s19 + $0x30] sm:$0xff]  ;;  %v1352_v2 = vld [vmem:[%s1472_s19 + $0x28] sm:$0xff]  ;;  %s1314_s24 = sshll.u32 %s1900_s12, 9  ;;  %s1149_s28 = sshll.u32 %s1900_s12, 3 }
  0x10   : > { %561 = vmatpush.bf16.msra.mxu0 %v1354_v0  ;;  %1355 = vmatpush.bf16.msra.mxu1 %v1354_v0  ;;  %v1351_v3 = vld [vmem:[%s1472_s19 + $0x20] sm:$0xff]  ;;  %v1350_v4 = vld [vmem:[%s1472_s19 + $0x18] sm:$0xff]  ;;  %v1349_v5 = vld [vmem:[%s1472_s19 + $0x10] sm:$0xff]  ;;  %s1520_s27 = scalar_lea.vmem %s1893_s2, %s1314_s24  ;;  %s240_s4 = scalar_lea.vmem %s1894_s3, %s1149_s28 }
  0x11   : > { %1356 = vmatpush.bf16.msra.mxu2 %v1354_v0  ;;  %1357 = vmatpush.bf16.msra.mxu3 %v1354_v0  ;;  %v1348_v6 = vld [vmem:[%s1472_s19 + $0x8] sm:$0xff]  ;;  %v1347_v7 = vld [vmem:[%s1472_s19] sm:$0xff]  ;;  %v1317_v13 = vld [vmem:[%s1485_s23 + $0x10] sm:$0xff] }
  0x12   : > { %v1315_v8 = vld [vmem:[%s1485_s23] sm:$0xff]  ;;  %v1316_v10 = vld [vmem:[%s1485_s23 + $0x8] sm:$0xff]  ;;  %v1325_v14 = vld [vmem:[%s1485_s23 + $0x50] sm:$0xff] }
  0x13   : > { %v1323_v9 = vld [vmem:[%s1485_s23 + $0x40] sm:$0xff]  ;;  %v1324_v11 = vld [vmem:[%s1485_s23 + $0x48] sm:$0xff]  ;;  %v1318_v16 = vld [vmem:[%s1485_s23 + $0x18] sm:$0xff] }
  0x14   : > { %562 = vmatpush.bf16.msra.mxu0 %v1353_v1  ;;  %1358 = vmatpush.bf16.msra.mxu1 %v1353_v1  ;;  %v1331_v12 = vld [vmem:[%s1485_s23 + $0x80] sm:$0xff]  ;;  %v1332_v15 = vld [vmem:[%s1485_s23 + $0x88] sm:$0xff]  ;;  %v1326_v17 = vld [vmem:[%s1485_s23 + $0x58] sm:$0xff] }
  0x15   : > { %1359 = vmatpush.bf16.msra.mxu2 %v1353_v1  ;;  %1360 = vmatpush.bf16.msra.mxu3 %v1353_v1  ;;  %v1333_v18 = vld [vmem:[%s1485_s23 + $0x90] sm:$0xff]  ;;  %v1339_v19 = vld [vmem:[%s1485_s23 + $0xc0] sm:$0xff]  ;;  %v1334_v22 = vld [vmem:[%s1485_s23 + $0x98] sm:$0xff] }
  0x16   : > { %v1319_v20 = vld [vmem:[%s1485_s23 + $0x20] sm:$0xff]  ;;  %v1340_v23 = vld [vmem:[%s1485_s23 + $0xc8] sm:$0xff]  ;;  %v1341_v27 = vld [vmem:[%s1485_s23 + $0xd0] sm:$0xff] }
  0x17   : > { %v1327_v21 = vld [vmem:[%s1485_s23 + $0x60] sm:$0xff]  ;;  %v1320_v24 = vld [vmem:[%s1485_s23 + $0x28] sm:$0xff]  ;;  %v1321_v28 = vld [vmem:[%s1485_s23 + $0x30] sm:$0xff] }
  0x18   : > { %563 = vmatpush.bf16.msra.mxu0 %v1352_v2  ;;  %1361 = vmatpush.bf16.msra.mxu1 %v1352_v2  ;;  %v1328_v25 = vld [vmem:[%s1485_s23 + $0x68] sm:$0xff]  ;;  %v1335_v26 = vld [vmem:[%s1485_s23 + $0xa0] sm:$0xff]  ;;  %v1329_v29 = vld [vmem:[%s1485_s23 + $0x70] sm:$0xff] }
  0x19   : > { %1362 = vmatpush.bf16.msra.mxu2 %v1352_v2  ;;  %1363 = vmatpush.bf16.msra.mxu3 %v1352_v2  ;;  %v1336_v30 = vld [vmem:[%s1485_s23 + $0xa8] sm:$0xff]  ;;  %v1342_v31 = vld [vmem:[%s1485_s23 + $0xd8] sm:$0xff]  ;;  %v1337_v34 = vld [vmem:[%s1485_s23 + $0xb0] sm:$0xff] }
  0x1a   : > { %v1322_v32 = vld [vmem:[%s1485_s23 + $0x38] sm:$0xff]  ;;  %v1343_v35 = vld [vmem:[%s1485_s23 + $0xe0] sm:$0xff]  ;;  %v1344_v39 = vld [vmem:[%s1485_s23 + $0xe8] sm:$0xff] }
  0x1b   : > { %v1330_v33 = vld [vmem:[%s1485_s23 + $0x78] sm:$0xff]  ;;  %v1345_v51 = vld [vmem:[%s1485_s23 + $0xf0] sm:$0xff] }
  0x1c   : > { %564 = vmatpush.bf16.msra.mxu0 %v1351_v3  ;;  %1364 = vmatpush.bf16.msra.mxu1 %v1351_v3  ;;  %v1338_v38 = vld [vmem:[%s1485_s23 + $0xb8] sm:$0xff] }
  0x1d   : > { %1365 = vmatpush.bf16.msra.mxu2 %v1351_v3  ;;  %1366 = vmatpush.bf16.msra.mxu3 %v1351_v3  ;;  %v1346_v0 = vld [vmem:[%s1485_s23 + $0xf8] sm:$0xff] }
  0x20   : > { %565 = vmatpush.bf16.msra.mxu0 %v1350_v4  ;;  %1367 = vmatpush.bf16.msra.mxu1 %v1350_v4 }
  0x21   : > { %1368 = vmatpush.bf16.msra.mxu2 %v1350_v4  ;;  %1369 = vmatpush.bf16.msra.mxu3 %v1350_v4 }
  0x24   : > { %566 = vmatpush.bf16.msra.mxu0 %v1349_v5  ;;  %1370 = vmatpush.bf16.msra.mxu1 %v1349_v5 }
  0x25   : > { %1371 = vmatpush.bf16.msra.mxu2 %v1349_v5  ;;  %1372 = vmatpush.bf16.msra.mxu3 %v1349_v5 }
  0x28   : > { %567 = vmatpush.bf16.msra.mxu0 %v1348_v6  ;;  %1373 = vmatpush.bf16.msra.mxu1 %v1348_v6 }
  0x29   : > { %1374 = vmatpush.bf16.msra.mxu2 %v1348_v6  ;;  %1375 = vmatpush.bf16.msra.mxu3 %v1348_v6 }
  0x2c   : > { %568 = vmatpush.bf16.msra.mxu0 %v1347_v7  ;;  %1376 = vmatpush.bf16.msra.mxu1 %v1347_v7 }
  0x2d   : > { %1377 = vmatpush.bf16.msra.mxu2 %v1347_v7  ;;  %1378 = vmatpush.bf16.msra.mxu3 %v1347_v7 }
  0x2f   : > { %569 = vmatmul.bf16.vlgmr.msra.gmra.mxu0 %v1315_v8  ;;  %609 = vmatmul.bf16.vlgmr.msra.gmra.mxu1 %v1323_v9 }
  0x30   : > { %649 = vmatmul.bf16.vlgmr.msra.gmra.mxu2 %v1331_v12  ;;  %689 = vmatmul.bf16.vlgmr.msra.gmra.mxu3 %v1339_v19 }
  0x3f   : > { %574 = vmatmul.bf16.gmra.mxu0 %v1316_v10  ;;  %614 = vmatmul.bf16.gmra.mxu1 %v1324_v11 }
  0x40   : > { %654 = vmatmul.bf16.gmra.mxu2 %v1332_v15  ;;  %694 = vmatmul.bf16.gmra.mxu3 %v1340_v23 }
  0x4f   : > { %579 = vmatmul.bf16.gmra.mxu0 %v1317_v13  ;;  %619 = vmatmul.bf16.gmra.mxu1 %v1325_v14 }
  0x50   : > { %659 = vmatmul.bf16.gmra.mxu2 %v1333_v18  ;;  %699 = vmatmul.bf16.gmra.mxu3 %v1341_v27 }
  0x5f   : > { %584 = vmatmul.bf16.gmra.mxu0 %v1318_v16  ;;  %624 = vmatmul.bf16.gmra.mxu1 %v1326_v17 }
  0x60   : > { %664 = vmatmul.bf16.gmra.mxu2 %v1334_v22  ;;  %704 = vmatmul.bf16.gmra.mxu3 %v1342_v31 }
  0x6f   : > { %589 = vmatmul.bf16.gmra.mxu0 %v1319_v20  ;;  %629 = vmatmul.bf16.gmra.mxu1 %v1327_v21 }
  0x70   : > { %669 = vmatmul.bf16.gmra.mxu2 %v1335_v26  ;;  %709 = vmatmul.bf16.gmra.mxu3 %v1343_v35 }
  0x7f   : > { %594 = vmatmul.bf16.gmra.mxu0 %v1320_v24  ;;  %634 = vmatmul.bf16.gmra.mxu1 %v1328_v25 }
  0x80   : > { %674 = vmatmul.bf16.gmra.mxu2 %v1336_v30  ;;  %714 = vmatmul.bf16.gmra.mxu3 %v1344_v39 }
  0x8f   : > { %599 = vmatmul.bf16.gmra.mxu0 %v1321_v28  ;;  %639 = vmatmul.bf16.gmra.mxu1 %v1329_v29 }
  0x90   : > { %679 = vmatmul.bf16.gmra.mxu2 %v1337_v34  ;;  %719 = vmatmul.bf16.gmra.mxu3 %v1345_v51 }
  0x9f   : > { %604 = vmatmul.bf16.gmra.mxu0 %v1322_v32  ;;  %644 = vmatmul.bf16.gmra.mxu1 %v1330_v33 }
  0xa0   : > { %684 = vmatmul.bf16.gmra.mxu2 %v1338_v38  ;;  %724 = vmatmul.bf16.gmra.mxu3 %v1346_v0 }
  0xac   : > { %v570_v36 = vpop.f32.mrf.mxu0  ;;  %v1522_v37 = vpop.f32.mrf.mxu1 }
  0xad   : > { %730 = vst [vmem:[%s1520_s27] sm:$0xff] %v570_v36  ;;  %v863_v42 = vmul.f32 %v570_v36, %v570_v36 }
  0xae   : > { %746 = vst [vmem:[%s1520_s27 + $0x80] sm:$0xff] %v1522_v37 }
  0xb3   : > { %v1543_v56 = vpop.f32.mrf.mxu2  ;;  %v1586_v10 = vpop.f32.mrf.mxu3 }
  0xb4   : > { %v572_v40 = vpop.f32.mrf.mxu0  ;;  %v1529_v41 = vpop.f32.mrf.mxu1  ;;  %762 = vst [vmem:[%s1520_s27 + $0x100] sm:$0xff] %v1543_v56 }
  0xb5   : > { %731 = vst [vmem:[%s1520_s27 + $0x8] sm:$0xff] %v572_v40  ;;  %v794_v43 = vadd.f32 %v572_v40, %v570_v36  ;;  %v864_v44 = vmul.f32 %v572_v40, %v572_v40 }
  0xb6   : > { %747 = vst [vmem:[%s1520_s27 + $0x88] sm:$0xff] %v1529_v41 }
  0xb7   : > { %v927_v45 = vadd.f32 %v864_v44, %v863_v42  ;;  %778 = vst [vmem:[%s1520_s27 + $0x180] sm:$0xff] %v1586_v10 }
  0xbb   : > { %v1554_v62 = vpop.f32.mrf.mxu2  ;;  %v1599_v14 = vpop.f32.mrf.mxu3 }
  0xbc   : > { %v575_v46 = vpop.f32.mrf.mxu0  ;;  %v1534_v47 = vpop.f32.mrf.mxu1  ;;  %763 = vst [vmem:[%s1520_s27 + $0x108] sm:$0xff] %v1554_v62 }
  0xbd   : > { %732 = vst [vmem:[%s1520_s27 + $0x10] sm:$0xff] %v575_v46  ;;  %v795_v48 = vadd.f32 %v794_v43, %v575_v46  ;;  %v865_v49 = vmul.f32 %v575_v46, %v575_v46 }
  0xbe   : > { %748 = vst [vmem:[%s1520_s27 + $0x90] sm:$0xff] %v1534_v47 }
  0xbf   : > { %v928_v50 = vadd.f32 %v927_v45, %v865_v49  ;;  %779 = vst [vmem:[%s1520_s27 + $0x188] sm:$0xff] %v1599_v14 }
  0xc3   : > { %v1566_v3 = vpop.f32.mrf.mxu2  ;;  %v1612_v18 = vpop.f32.mrf.mxu3 }
  0xc4   : > { %v577_v52 = vpop.f32.mrf.mxu0  ;;  %v1540_v53 = vpop.f32.mrf.mxu1  ;;  %764 = vst [vmem:[%s1520_s27 + $0x110] sm:$0xff] %v1566_v3 }
  0xc5   : > { %733 = vst [vmem:[%s1520_s27 + $0x18] sm:$0xff] %v577_v52  ;;  %v796_v54 = vadd.f32 %v795_v48, %v577_v52  ;;  %v866_v55 = vmul.f32 %v577_v52, %v577_v52 }
  0xc6   : > { %749 = vst [vmem:[%s1520_s27 + $0x98] sm:$0xff] %v1540_v53 }
  0xc7   : > { %v929_v57 = vadd.f32 %v928_v50, %v866_v55  ;;  %780 = vst [vmem:[%s1520_s27 + $0x190] sm:$0xff] %v1612_v18 }
  0xcb   : > { %v1575_v6 = vpop.f32.mrf.mxu2  ;;  %v1625_v22 = vpop.f32.mrf.mxu3 }
  0xcc   : > { %v580_v58 = vpop.f32.mrf.mxu0  ;;  %v1549_v59 = vpop.f32.mrf.mxu1  ;;  %765 = vst [vmem:[%s1520_s27 + $0x118] sm:$0xff] %v1575_v6 }
  0xcd   : > { %734 = vst [vmem:[%s1520_s27 + $0x20] sm:$0xff] %v580_v58  ;;  %v1552_v60 = vadd.f32 %v796_v54, %v580_v58  ;;  %v867_v61 = vmul.f32 %v580_v58, %v580_v58 }
  0xce   : > { %750 = vst [vmem:[%s1520_s27 + $0xa0] sm:$0xff] %v1549_v59 }
  0xcf   : > { %v1558_v63 = vadd.f32 %v929_v57, %v867_v61  ;;  %781 = vst [vmem:[%s1520_s27 + $0x198] sm:$0xff] %v1625_v22 }
  0xd3   : > { %v1584_v9 = vpop.f32.mrf.mxu2  ;;  %v1638_v26 = vpop.f32.mrf.mxu3 }
  0xd4   : > { %v582_v1 = vpop.f32.mrf.mxu0  ;;  %v1563_v2 = vpop.f32.mrf.mxu1  ;;  %766 = vst [vmem:[%s1520_s27 + $0x120] sm:$0xff] %v1584_v9 }
  0xd5   : > { %735 = vst [vmem:[%s1520_s27 + $0x28] sm:$0xff] %v582_v1  ;;  %v868_v31 = vmul.f32 %v582_v1, %v582_v1  ;;  %v798_v32 = vadd.f32 %v1552_v60, %v582_v1 }
  0xd6   : > { %751 = vst [vmem:[%s1520_s27 + $0xa8] sm:$0xff] %v1563_v2 }
  0xd7   : > { %782 = vst [vmem:[%s1520_s27 + $0x1a0] sm:$0xff] %v1638_v26  ;;  %v931_v34 = vadd.f32 %v1558_v63, %v868_v31 }
  0xdb   : > { %v1597_v13 = vpop.f32.mrf.mxu2  ;;  %v1651_v30 = vpop.f32.mrf.mxu3 }
  0xdc   : > { %v585_v4 = vpop.f32.mrf.mxu0  ;;  %v1572_v5 = vpop.f32.mrf.mxu1  ;;  %767 = vst [vmem:[%s1520_s27 + $0x128] sm:$0xff] %v1597_v13 }
  0xdd   : > { %736 = vst [vmem:[%s1520_s27 + $0x30] sm:$0xff] %v585_v4  ;;  %v869_v33 = vmul.f32 %v585_v4, %v585_v4  ;;  %v799_v35 = vadd.f32 %v798_v32, %v585_v4 }
  0xde   : > { %752 = vst [vmem:[%s1520_s27 + $0xb0] sm:$0xff] %v1572_v5 }
  0xdf   : > { %783 = vst [vmem:[%s1520_s27 + $0x1a8] sm:$0xff] %v1651_v30  ;;  %v932_v40 = vadd.f32 %v931_v34, %v869_v33 }
  0xe3   : > { %v1610_v17 = vpop.f32.mrf.mxu2  ;;  %v1666_v45 = vpop.f32.mrf.mxu3 }
  0xe4   : > { %v587_v7 = vpop.f32.mrf.mxu0  ;;  %v1581_v8 = vpop.f32.mrf.mxu1  ;;  %768 = vst [vmem:[%s1520_s27 + $0x130] sm:$0xff] %v1610_v17 }
  0xe5   : > { %737 = vst [vmem:[%s1520_s27 + $0x38] sm:$0xff] %v587_v7  ;;  %v870_v36 = vmul.f32 %v587_v7, %v587_v7  ;;  %v800_v42 = vadd.f32 %v799_v35, %v587_v7 }
  0xe6   : > { %753 = vst [vmem:[%s1520_s27 + $0xb8] sm:$0xff] %v1581_v8 }
  0xe7   : > { %v933_v46 = vadd.f32 %v932_v40, %v870_v36  ;;  %784 = vst [vmem:[%s1520_s27 + $0x1b0] sm:$0xff] %v1666_v45 }
  0xeb   : > { %v1623_v21 = vpop.f32.mrf.mxu2  ;;  %v1679_v4 = vpop.f32.mrf.mxu3 }
  0xec   : > { %v590_v11 = vpop.f32.mrf.mxu0  ;;  %v1594_v12 = vpop.f32.mrf.mxu1  ;;  %769 = vst [vmem:[%s1520_s27 + $0x138] sm:$0xff] %v1623_v21 }
  0xed   : > { %738 = vst [vmem:[%s1520_s27 + $0x40] sm:$0xff] %v590_v11  ;;  %v871_v43 = vmul.f32 %v590_v11, %v590_v11  ;;  %v801_v48 = vadd.f32 %v800_v42, %v590_v11 }
  0xee   : > { %754 = vst [vmem:[%s1520_s27 + $0xc0] sm:$0xff] %v1594_v12 }
  0xef   : > { %v934_v50 = vadd.f32 %v933_v46, %v871_v43  ;;  %785 = vst [vmem:[%s1520_s27 + $0x1b8] sm:$0xff] %v1679_v4 }
  0xf3   : > { %v1636_v25 = vpop.f32.mrf.mxu2  ;;  %v1692_v43 = vpop.f32.mrf.mxu3 }
  0xf4   : > { %v592_v15 = vpop.f32.mrf.mxu0  ;;  %v1607_v16 = vpop.f32.mrf.mxu1  ;;  %770 = vst [vmem:[%s1520_s27 + $0x140] sm:$0xff] %v1636_v25 }
  0xf5   : > { %739 = vst [vmem:[%s1520_s27 + $0x48] sm:$0xff] %v592_v15  ;;  %v872_v49 = vmul.f32 %v592_v15, %v592_v15  ;;  %v802_v51 = vadd.f32 %v801_v48, %v592_v15 }
  0xf6   : > { %755 = vst [vmem:[%s1520_s27 + $0xc8] sm:$0xff] %v1607_v16 }
  0xf7   : > { %v935_v54 = vadd.f32 %v934_v50, %v872_v49  ;;  %786 = vst [vmem:[%s1520_s27 + $0x1c0] sm:$0xff] %v1692_v43  ;;  %v880_v49 = vmul.f32 %v1529_v41, %v1529_v41 }
  0xfb   : > { %v1649_v29 = vpop.f32.mrf.mxu2 }
  0xfc   : > { %v595_v19 = vpop.f32.mrf.mxu0  ;;  %v1620_v20 = vpop.f32.mrf.mxu1  ;;  %771 = vst [vmem:[%s1520_s27 + $0x148] sm:$0xff] %v1649_v29 }
  0xfd   : > { %740 = vst [vmem:[%s1520_s27 + $0x50] sm:$0xff] %v595_v19  ;;  %v873_v52 = vmul.f32 %v595_v19, %v595_v19  ;;  %v803_v55 = vadd.f32 %v802_v51, %v595_v19 }
  0xfe   : > { %756 = vst [vmem:[%s1520_s27 + $0xd0] sm:$0xff] %v1620_v20 }
  0xff   : > { %v936_v61 = vadd.f32 %v935_v54, %v873_v52  ;;  %v881_v52 = vmul.f32 %v1534_v47, %v1534_v47 }
 0x103   : > { %v1664_v44 = vpop.f32.mrf.mxu2 }
 0x104   : > { %v597_v23 = vpop.f32.mrf.mxu0  ;;  %v1633_v24 = vpop.f32.mrf.mxu1  ;;  %772 = vst [vmem:[%s1520_s27 + $0x150] sm:$0xff] %v1664_v44 }
 0x105   : > { %741 = vst [vmem:[%s1520_s27 + $0x58] sm:$0xff] %v597_v23  ;;  %v874_v57 = vmul.f32 %v597_v23, %v597_v23  ;;  %v804_v63 = vadd.f32 %v803_v55, %v597_v23 }
 0x106   : > { %757 = vst [vmem:[%s1520_s27 + $0xd8] sm:$0xff] %v1633_v24 }
 0x107   : > { %v937_v7 = vadd.f32 %v936_v61, %v874_v57 }
 0x10b   : > { %v1677_v1 = vpop.f32.mrf.mxu2 }
 0x10c   : > { %v600_v27 = vpop.f32.mrf.mxu0  ;;  %v1646_v28 = vpop.f32.mrf.mxu1  ;;  %773 = vst [vmem:[%s1520_s27 + $0x158] sm:$0xff] %v1677_v1 }
 0x10d   : > { %742 = vst [vmem:[%s1520_s27 + $0x60] sm:$0xff] %v600_v27  ;;  %v875_v0 = vmul.f32 %v600_v27, %v600_v27  ;;  %v805_v11 = vadd.f32 %v804_v63, %v600_v27  ;;  %v1714_v63 = vpop.f32.mrf.mxu3 }
 0x10e   : > { %758 = vst [vmem:[%s1520_s27 + $0xe0] sm:$0xff] %v1646_v28 }
 0x10f   : > { %v938_v19 = vadd.f32 %v937_v7, %v875_v0  ;;  %787 = vst [vmem:[%s1520_s27 + $0x1c8] sm:$0xff] %v1714_v63 }
 0x113   : > { %v1690_v42 = vpop.f32.mrf.mxu2 }
 0x114   : > { %v602_v38 = vpop.f32.mrf.mxu0  ;;  %v1661_v39 = vpop.f32.mrf.mxu1  ;;  %774 = vst [vmem:[%s1520_s27 + $0x160] sm:$0xff] %v1690_v42 }
 0x115   : > { %743 = vst [vmem:[%s1520_s27 + $0x68] sm:$0xff] %v602_v38  ;;  %v876_v15 = vmul.f32 %v602_v38, %v602_v38  ;;  %v806_v31 = vadd.f32 %v805_v11, %v602_v38  ;;  %v879_v38 = vmul.f32 %v1522_v37, %v1522_v37 }
 0x116   : > { %759 = vst [vmem:[%s1520_s27 + $0xe8] sm:$0xff] %v1661_v39 }
 0x117   : > { %v939_v32 = vadd.f32 %v938_v19, %v876_v15  ;;  %v885_v15 = vmul.f32 %v1572_v5, %v1572_v5 }
 0x11b   : > { %v1712_v61 = vpop.f32.mrf.mxu2 }
 0x11c   : > { %v605_v58 = vpop.f32.mrf.mxu0  ;;  %v1674_v60 = vpop.f32.mrf.mxu1  ;;  %775 = vst [vmem:[%s1520_s27 + $0x168] sm:$0xff] %v1712_v61 }
 0x11d   : > { %744 = vst [vmem:[%s1520_s27 + $0x70] sm:$0xff] %v605_v58  ;;  %v877_v23 = vmul.f32 %v605_v58, %v605_v58  ;;  %v807_v33 = vadd.f32 %v806_v31, %v605_v58 }
 0x11e   : > { %760 = vst [vmem:[%s1520_s27 + $0xf0] sm:$0xff] %v1674_v60 }
 0x11f   : > { %v940_v36 = vadd.f32 %v939_v32, %v877_v23  ;;  %v886_v23 = vmul.f32 %v1581_v8, %v1581_v8 }
 0x124   : > { %v607_v34 = vpop.f32.mrf.mxu0  ;;  %v1687_v35 = vpop.f32.mrf.mxu1 }
 0x125   : > { %745 = vst [vmem:[%s1520_s27 + $0x78] sm:$0xff] %v607_v34  ;;  %v808_v40 = vadd.f32 %v807_v33, %v607_v34  ;;  %v878_v27 = vmul.f32 %v607_v34, %v607_v34  ;;  %v1732_v33 = vpop.f32.mrf.mxu2  ;;  %v1734_v34 = vpop.f32.mrf.mxu3 }
 0x126   : > { %761 = vst [vmem:[%s1520_s27 + $0xf8] sm:$0xff] %v1687_v35 }
 0x127   : > { %v809_v46 = vadd.f32 %v808_v40, %v1522_v37  ;;  %v941_v48 = vadd.f32 %v940_v36, %v878_v27  ;;  %v882_v37 = vmul.f32 %v1540_v53, %v1540_v53  ;;  %776 = vst [vmem:[%s1520_s27 + $0x170] sm:$0xff] %v1732_v33 }
 0x128   : > { %788 = vst [vmem:[%s1520_s27 + $0x1d0] sm:$0xff] %v1734_v34 }
 0x129   : > { %v810_v50 = vadd.f32 %v809_v46, %v1529_v41  ;;  %v942_v51 = vadd.f32 %v941_v48, %v879_v38  ;;  %v883_v41 = vmul.f32 %v1549_v59, %v1549_v59  ;;  %v889_v38 = vmul.f32 %v1620_v20, %v1620_v20 }
 0x12b   : > { %v811_v54 = vadd.f32 %v810_v50, %v1534_v47  ;;  %v943_v55 = vadd.f32 %v942_v51, %v880_v49  ;;  %v890_v49 = vmul.f32 %v1633_v24, %v1633_v24 }
 0x12d   : > { %v812_v57 = vadd.f32 %v811_v54, %v1540_v53  ;;  %v944_v58 = vadd.f32 %v943_v55, %v881_v52  ;;  %v884_v53 = vmul.f32 %v1563_v2, %v1563_v2  ;;  %v1752_v51 = vpop.f32.mrf.mxu2  ;;  %v1754_v52 = vpop.f32.mrf.mxu3  ;;  %v891_v54 = vmul.f32 %v1646_v28, %v1646_v28 }
 0x12e   : > { %777 = vst [vmem:[%s1520_s27 + $0x178] sm:$0xff] %v1752_v51 }
 0x12f   : > { %v813_v0 = vadd.f32 %v812_v57, %v1549_v59  ;;  %v945_v47 = vadd.f32 %v944_v58, %v882_v37  ;;  %789 = vst [vmem:[%s1520_s27 + $0x1d8] sm:$0xff] %v1754_v52 }
 0x131   : > { %v814_v7 = vadd.f32 %v813_v0, %v1563_v2  ;;  %v946_v11 = vadd.f32 %v945_v47, %v883_v41  ;;  %v887_v2 = vmul.f32 %v1594_v12, %v1594_v12  ;;  %v893_v41 = vmul.f32 %v1674_v60, %v1674_v60 }
 0x133   : > { %v947_v19 = vadd.f32 %v946_v11, %v884_v53  ;;  %v815_v31 = vadd.f32 %v814_v7, %v1572_v5  ;;  %v888_v5 = vmul.f32 %v1607_v16, %v1607_v16 }
 0x135   : > { %v816_v59 = vadd.f32 %v815_v31, %v1581_v8  ;;  %v948_v32 = vadd.f32 %v947_v19, %v885_v15  ;;  %v1772_v53 = vpop.f32.mrf.mxu3 }
 0x136   : > { %790 = vst [vmem:[%s1520_s27 + $0x1e0] sm:$0xff] %v1772_v53 }
 0x137   : > { %v817_v36 = vadd.f32 %v816_v59, %v1594_v12  ;;  %v949_v40 = vadd.f32 %v948_v32, %v886_v23  ;;  %v898_v59 = vmul.f32 %v1575_v6, %v1575_v6 }
 0x139   : > { %v818_v8 = vadd.f32 %v817_v36, %v1607_v16  ;;  %v950_v27 = vadd.f32 %v949_v40, %v887_v2 }
 0x13b   : > { %v819_v46 = vadd.f32 %v818_v8, %v1620_v20  ;;  %v951_v48 = vadd.f32 %v950_v27, %v888_v5 }
 0x13d   : > { %v820_v12 = vadd.f32 %v819_v46, %v1633_v24  ;;  %v952_v50 = vadd.f32 %v951_v48, %v889_v38  ;;  %v892_v24 = vmul.f32 %v1661_v39, %v1661_v39  ;;  %v902_v46 = vmul.f32 %v1623_v21, %v1623_v21 }
 0x13f   : > { %v821_v16 = vadd.f32 %v820_v12, %v1646_v28  ;;  %v953_v20 = vadd.f32 %v952_v50, %v890_v49  ;;  %v894_v28 = vmul.f32 %v1687_v35, %v1687_v35 }
 0x141   : > { %v954_v55 = vadd.f32 %v953_v20, %v891_v54  ;;  %v822_v37 = vadd.f32 %v821_v16, %v1661_v39  ;;  %v895_v39 = vmul.f32 %v1543_v56, %v1543_v56 }
 0x143   : > { %v955_v57 = vadd.f32 %v954_v55, %v892_v24  ;;  %v823_v58 = vadd.f32 %v822_v37, %v1674_v60  ;;  %v896_v60 = vmul.f32 %v1554_v62, %v1554_v62  ;;  %v906_v24 = vmul.f32 %v1677_v1, %v1677_v1 }
 0x145   : > { %v956_v0 = vadd.f32 %v955_v57, %v893_v41  ;;  %v824_v47 = vadd.f32 %v823_v58, %v1687_v35  ;;  %v897_v35 = vmul.f32 %v1566_v3, %v1566_v3 }
 0x147   : > { %v825_v7 = vadd.f32 %v824_v47, %v1543_v56  ;;  %v957_v11 = vadd.f32 %v956_v0, %v894_v28  ;;  %v1788_v56 = vpop.f32.mrf.mxu3 }
 0x148   : > { %791 = vst [vmem:[%s1520_s27 + $0x1e8] sm:$0xff] %v1788_v56 }
 0x149   : > { %v826_v15 = vadd.f32 %v825_v7, %v1554_v62  ;;  %v958_v19 = vadd.f32 %v957_v11, %v895_v39  ;;  %v899_v62 = vmul.f32 %v1584_v9, %v1584_v9 }
 0x14b   : > { %v827_v31 = vadd.f32 %v826_v15, %v1566_v3  ;;  %v959_v23 = vadd.f32 %v958_v19, %v896_v60  ;;  %v900_v3 = vmul.f32 %v1597_v13, %v1597_v13  ;;  %v910_v60 = vmul.f32 %v1752_v51, %v1752_v51 }
 0x14d   : > { %v828_v32 = vadd.f32 %v827_v31, %v1575_v6  ;;  %v960_v2 = vadd.f32 %v959_v23, %v897_v35  ;;  %v901_v6 = vmul.f32 %v1610_v17, %v1610_v17 }
 0x14f   : > { %v829_v36 = vadd.f32 %v828_v32, %v1584_v9  ;;  %v961_v40 = vadd.f32 %v960_v2, %v898_v59  ;;  %v1804_v9 = vpop.f32.mrf.mxu3 }
 0x150   : > { %792 = vst [vmem:[%s1520_s27 + $0x1f0] sm:$0xff] %v1804_v9 }
 0x151   : > { %v830_v5 = vadd.f32 %v829_v36, %v1597_v13  ;;  %v962_v8 = vadd.f32 %v961_v40, %v899_v62  ;;  %v903_v13 = vmul.f32 %v1636_v25, %v1636_v25 }
 0x153   : > { %v963_v27 = vadd.f32 %v962_v8, %v900_v3  ;;  %v831_v38 = vadd.f32 %v830_v5, %v1610_v17  ;;  %v904_v17 = vmul.f32 %v1649_v29, %v1649_v29 }
 0x155   : > { %v832_v48 = vadd.f32 %v831_v38, %v1623_v21  ;;  %v964_v49 = vadd.f32 %v963_v27, %v901_v6  ;;  %v905_v21 = vmul.f32 %v1664_v44, %v1664_v44 }
 0x157   : > { %v833_v12 = vadd.f32 %v832_v48, %v1636_v25  ;;  %v965_v50 = vadd.f32 %v964_v49, %v902_v46  ;;  %v727_v25 = vpop.f32.mrf.mxu3 }
 0x158   : > { %793 = vst [vmem:[%s1520_s27 + $0x1f8] sm:$0xff] %v727_v25 }
 0x159   : > { %v834_v16 = vadd.f32 %v833_v12, %v1649_v29  ;;  %v966_v54 = vadd.f32 %v965_v50, %v903_v13  ;;  %v907_v29 = vmul.f32 %v1690_v42, %v1690_v42  ;;  %v922_v50 = vmul.f32 %v1754_v52, %v1754_v52 }
 0x15b   : > { %v835_v20 = vadd.f32 %v834_v16, %v1664_v44  ;;  %v967_v55 = vadd.f32 %v966_v54, %v904_v17  ;;  %v908_v44 = vmul.f32 %v1712_v61, %v1712_v61  ;;  %v923_v54 = vmul.f32 %v1772_v53, %v1772_v53 }
 0x15d   : > { %v836_v37 = vadd.f32 %v835_v20, %v1677_v1  ;;  %v968_v57 = vadd.f32 %v967_v55, %v905_v21  ;;  %v909_v1 = vmul.f32 %v1732_v33, %v1732_v33  ;;  %v924_v20 = vmul.f32 %v1788_v56, %v1788_v56 }
 0x15f   : > { %v969_v58 = vadd.f32 %v968_v57, %v906_v24  ;;  %v837_v41 = vadd.f32 %v836_v37, %v1690_v42  ;;  %v911_v42 = vmul.f32 %v1586_v10, %v1586_v10  ;;  %v925_v37 = vmul.f32 %v1804_v9, %v1804_v9 }
 0x160   : > { %v926_v57 = vmul.f32 %v727_v25, %v727_v25 }
 0x161   : > { %v970_v0 = vadd.f32 %v969_v58, %v907_v29  ;;  %v838_v47 = vadd.f32 %v837_v41, %v1712_v61  ;;  %v912_v61 = vmul.f32 %v1599_v14, %v1599_v14 }
 0x163   : > { %v971_v28 = vadd.f32 %v970_v0, %v908_v44  ;;  %v839_v39 = vadd.f32 %v838_v47, %v1732_v33  ;;  %v913_v33 = vmul.f32 %v1612_v18, %v1612_v18 }
 0x165   : > { %v972_v7 = vadd.f32 %v971_v28, %v909_v1  ;;  %v840_v11 = vadd.f32 %v839_v39, %v1752_v51  ;;  %v914_v51 = vmul.f32 %v1625_v22, %v1625_v22 }
 0x167   : > { %v841_v15 = vadd.f32 %v840_v11, %v1586_v10  ;;  %v973_v19 = vadd.f32 %v972_v7, %v910_v60  ;;  %v915_v10 = vmul.f32 %v1638_v26, %v1638_v26 }
 0x169   : > { %v842_v35 = vadd.f32 %v841_v15, %v1599_v14  ;;  %v974_v31 = vadd.f32 %v973_v19, %v911_v42  ;;  %v916_v14 = vmul.f32 %v1651_v30, %v1651_v30 }
 0x16b   : > { %v843_v23 = vadd.f32 %v842_v35, %v1612_v18  ;;  %v975_v59 = vadd.f32 %v974_v31, %v912_v61  ;;  %v917_v18 = vmul.f32 %v1666_v45, %v1666_v45 }
 0x16d   : > { %v844_v32 = vadd.f32 %v843_v23, %v1625_v22  ;;  %v976_v2 = vadd.f32 %v975_v59, %v913_v33  ;;  %v918_v22 = vmul.f32 %v1679_v4, %v1679_v4 }
 0x16f   : > { %v845_v62 = vadd.f32 %v844_v32, %v1638_v26  ;;  %v977_v36 = vadd.f32 %v976_v2, %v914_v51  ;;  %v919_v26 = vmul.f32 %v1692_v43, %v1692_v43 }
 0x171   : > { %v846_v40 = vadd.f32 %v845_v62, %v1651_v30  ;;  %v978_v3 = vadd.f32 %v977_v36, %v915_v10  ;;  %v920_v30 = vmul.f32 %v1714_v63, %v1714_v63 }
 0x173   : > { %v979_v5 = vadd.f32 %v978_v3, %v916_v14  ;;  %v847_v8 = vadd.f32 %v846_v40, %v1666_v45  ;;  %v921_v45 = vmul.f32 %v1734_v34, %v1734_v34 }
 0x175   : > { %v848_v6 = vadd.f32 %v847_v8, %v1679_v4  ;;  %v980_v27 = vadd.f32 %v979_v5, %v917_v18 }
 0x177   : > { %v849_v38 = vadd.f32 %v848_v6, %v1692_v43  ;;  %v981_v46 = vadd.f32 %v980_v27, %v918_v22 }
 0x179   : > { %v850_v48 = vadd.f32 %v849_v38, %v1714_v63  ;;  %v982_v49 = vadd.f32 %v981_v46, %v919_v26 }
 0x17b   : > { %v851_v13 = vadd.f32 %v850_v48, %v1734_v34  ;;  %v983_v12 = vadd.f32 %v982_v49, %v920_v30 }
 0x17d   : > { %v852_v4 = vadd.f32 %v851_v13, %v1754_v52  ;;  %v984_v17 = vadd.f32 %v983_v12, %v921_v45 }
 0x17f   : > { %v985_v43 = vadd.f32 %v984_v17, %v922_v50  ;;  %v853_v16 = vadd.f32 %v852_v4, %v1772_v53 }
 0x181   : > { %v986_v63 = vadd.f32 %v985_v43, %v923_v54  ;;  %v854_v21 = vadd.f32 %v853_v16, %v1788_v56 }
 0x183   : > { %v987_v34 = vadd.f32 %v986_v63, %v924_v20  ;;  %v855_v55 = vadd.f32 %v854_v21, %v1804_v9 }
 0x185   : > { %v988_v52 = vadd.f32 %v987_v34, %v925_v37  ;;  %v856_v24 = vadd.f32 %v855_v55, %v727_v25 }
 0x187   : > { %v857_v58 = vrot.slane %v856_v24, 4  ;;  %v989_v41 = vadd.f32 %v988_v52, %v926_v57 }
 0x189   : > { %v858_v29 = vadd.f32 %v857_v58, %v856_v24  ;;  %v990_v53 = vrot.slane %v989_v41, 4 }
 0x18b   : > { %v859_v0 = vrot.slane %v858_v29, 2  ;;  %v991_v47 = vadd.f32 %v990_v53, %v989_v41 }
 0x18d   : > { %v860_v44 = vadd.f32 %v859_v0, %v858_v29  ;;  %v992_v28 = vrot.slane %v991_v47, 2 }
 0x18f   : > { %v861_v39 = vrot.slane %v860_v44, 1  ;;  %v993_v56 = vadd.f32 %v992_v28, %v991_v47 }
 0x191   : > { %v994_v1 = vrot.slane %v993_v56, 1  ;;  %v862_v7 = vadd.f32 %v861_v39, %v860_v44 }
 0x193   : > { %v995_v11 = vadd.f32 %v994_v1, %v993_v56 }
 0x195   : > { %v997_v9 = vsel %vm996_vm0, %v862_v7, %v995_v11 }
 0x196   : > { %v999_v25 = vsel %vm998_vm1, %v997_v9, 0.0 }
 0x197   : > { %1007 = vst [vmem:[%s240_s4] sm:$0xff] %v999_v25 }
 0x198 PF: > { %s14_s14 = sadd.s32 1, %s1426_s14   ;;  %s1895_s12 = smov %s1422_s13 }
 0x199   : > { %p11_p5 = scmp.ge.s32.totalorder %s14_s14, 6   ;;  %s1896_s13 = smov %s1898_s15 }
 0x19b   :  { %13 = sbr.rel (!%p11_p5) target bundleno = 2 (0x2), region = 77 }

</bundles_post_ra>
